<compile_context>
chip_gen: v5e
topology: v5e:2x2
jax: 0.10.0
libtpu: 0.0.40
codegen_flags: <defaults>
</compile_context>

<pallas_src>
import numpy as np

import jax
import jax.numpy as jnp
from jax import lax
from jax.experimental import pallas as pl
from jax.experimental.pallas import tpu as pltpu


def _scaled_projection_kernel(x_ref, s_ref, t_ref, w_ref, r_ref, b_ref, o_ref):
    """Single grid step for the whole batch.

    x_ref : (N, cin, p_in)        input at native resolution, NCHW-flat (f32)
    s_ref : (cin, 1), t_ref: (cin, 1)   folded BatchNorm scale / shift (f32)
    w_ref : (ntaps, cout, cin)    per-live-tap conv weight slices (bf16)
    r_ref : (ntaps, p_in, p_out)  constant 0/1 routing matrices implementing
                                  nearest-upsample + dilated tap shift + zero pad (bf16)
    b_ref : (cout, 1)             conv bias (f32)
    o_ref : (N, cout, p_out)      NCHW-flat output (f32), lane-dense stores
    """
    n = x_ref.shape[0]
    ntaps = w_ref.shape[0]
    cout = o_ref.shape[1]
    p_out = o_ref.shape[2]

    # Hoisted once: tiny per-channel constants.
    s = s_ref[...]                                   # (cin, 1) f32
    t = t_ref[...]                                   # (cin, 1) f32
    b = b_ref[...]                                   # (cout, 1) f32

    for img in range(n):                             # static unrolled, N is tiny
        # BatchNorm (eval) in f32 for accuracy, then bf16 operands for the MXU.
        x_bn = (x_ref[img] * s + t).astype(jnp.bfloat16)          # (cin, p_in)
        acc = jnp.zeros((cout, p_out), jnp.float32)
        for tap in range(ntaps):                     # static, <= 9
            # Conv tap applied at INPUT resolution: (cout,cin) @ (cin,p_in).
            y = jnp.dot(w_ref[tap], x_bn, preferred_element_type=jnp.float32)
            # Upsample + shift + zero padding as one lane-dense routing matmul:
            # (cout,p_in) @ (p_in,p_out).  R is 0/1 so bf16 is exact.
            acc = acc + jnp.dot(y.astype(jnp.bfloat16), r_ref[tap],
                                preferred_element_type=jnp.float32)
        o_ref[img] = (acc + b).astype(o_ref.dtype)   # 256-wide lane-dense store


def _routing_matrices(live_taps, h_in, w_in, size, scale):
    """Constant 0/1 matrices R_tap (p_in, p_out).

    R_tap[i, r*size + c] = 1 iff output pixel (r, c), read through tap (kh, kw)
    of the dilated conv (offset ((kh-1)*scale, (kw-1)*scale)) into the
    zero-padded nearest-upsampled image, sources low-res input pixel i.
    Out-of-range (zero-padding) reads leave the column all-zero.
    """
    p_in, p_out = h_in * w_in, size * size
    # PyTorch UpsamplingNearest2d convention: src = floor(dst * in / out).
    idx_h = (np.arange(size) * h_in) // size
    idx_w = (np.arange(size) * w_in) // size
    mats = np.zeros((len(live_taps), p_in, p_out), np.float32)
    out_flat = np.arange(p_out)
    for tix, (kh, kw) in enumerate(live_taps):
        rr = np.arange(size)[:, None] + (kh - 1) * scale           # (size, 1)
        cc = np.arange(size)[None, :] + (kw - 1) * scale           # (1, size)
        valid = ((rr >= 0) & (rr < size) & (cc >= 0) & (cc < size)).reshape(-1)
        src = (idx_h[np.clip(rr, 0, size - 1)] * w_in
               + idx_w[np.clip(cc, 0, size - 1)]).reshape(-1)      # (p_out,)
        mats[tix, src[valid], out_flat[valid]] = 1.0
    return mats


def scaled_projection_forward(x_nchw, params, *, size, scale=25, eps=1e-5):
    """Forward pass of ScaledProjection (eval mode).

    x_nchw: (N, Cin, H_in, W_in) float32.  Returns (N, Cout, size, size) float32.
    Assumes conv padding == dilation == scale and padding_mode='zeros', exactly
    as hardcoded by the PyTorch module.
    """
    gamma, beta, run_mean, run_var, w_oihw, bias = params
    n, cin, h_in, w_in = x_nchw.shape
    cout = w_oihw.shape[0]
    p_in, p_out = h_in * w_in, size * size

    # Trace-time dead-tap elimination (pruning only; correctness is carried by
    # the routing matrices).  Center tap is always live.
    live_taps = tuple((kh, kw) for kh in range(3) for kw in range(3)
                      if abs(kh - 1) * scale < size and abs(kw - 1) * scale < size)

    r_taps = jnp.asarray(_routing_matrices(live_taps, h_in, w_in, size, scale),
                         dtype=jnp.bfloat16)
    w_taps = jnp.stack([w_oihw[:, :, kh, kw] for (kh, kw) in live_taps],
                       axis=0).astype(jnp.bfloat16)

    # Folded BatchNorm (eval) scale/shift, kept in f32 for accuracy.
    s_vec = gamma / jnp.sqrt(run_var + eps)
    t_vec = beta - run_mean * s_vec

    x_flat = x_nchw.reshape(n, cin, p_in)            # free, contiguous reshape

    out_flat = pl.pallas_call(
        _scaled_projection_kernel,
        out_shape=jax.ShapeDtypeStruct((n, cout, p_out), jnp.float32),
        # Single step, whole arrays resident in VMEM (everything here is tiny).
        in_specs=[pl.BlockSpec(memory_space=pltpu.MemorySpace.VMEM)
                  for _ in range(6)],
        out_specs=pl.BlockSpec(memory_space=pltpu.MemorySpace.VMEM),
    )(x_flat,
      s_vec.reshape(cin, 1).astype(jnp.float32),
      t_vec.reshape(cin, 1).astype(jnp.float32),
      w_taps,
      r_taps,
      bias.reshape(cout, 1).astype(jnp.float32))

    # NCHW-flat -> NCHW: free contiguous reshape, no transpose.
    return out_flat.reshape(n, cout, size, size)


def _reference_forward(x_nchw, params, *, size, scale=25, eps=1e-5):
    """Pure-JAX reference (no Pallas) for correctness checking."""
    gamma, beta, run_mean, run_var, w_oihw, bias = params
    n, cin, h_in, w_in = x_nchw.shape
    # BatchNorm2d (eval)
    xb = (x_nchw - run_mean[None, :, None, None]) / jnp.sqrt(
        run_var[None, :, None, None] + eps)
    xb = xb * gamma[None, :, None, None] + beta[None, :, None, None]
    # UpsamplingNearest2d
    idx_h = (jnp.arange(size) * h_in) // size
    idx_w = (jnp.arange(size) * w_in) // size
    x_up = xb[:, :, idx_h][:, :, :, idx_w]
    # Dilated conv with zero padding
    out = lax.conv_general_dilated(
        x_up, w_oihw, window_strides=(1, 1),
        padding=[(scale, scale), (scale, scale)],
        rhs_dilation=(scale, scale),
        dimension_numbers=("NCHW", "OIHW", "NCHW"))
    return out + bias[None, :, None, None]


def _init_params(key, cin, cout):
    k = jax.random.split(key, 6)
    gamma = 1.0 + 0.1 * jax.random.normal(k[0], (cin,), jnp.float32)
    beta = 0.1 * jax.random.normal(k[1], (cin,), jnp.float32)
    run_mean = 0.1 * jax.random.normal(k[2], (cin,), jnp.float32)
    run_var = jnp.abs(1.0 + 0.1 * jax.random.normal(k[3], (cin,), jnp.float32))
    fan_in = cin * 3 * 3
    bound = 1.0 / jnp.sqrt(fan_in)
    w = jax.random.uniform(k[4], (cout, cin, 3, 3), jnp.float32, -bound, bound)
    b = jax.random.uniform(k[5], (cout,), jnp.float32, -bound, bound)
    return gamma, beta, run_mean, run_var, w, b


if __name__ == "__main__":
    key = jax.random.PRNGKey(0)
    kx, kp = jax.random.split(key)

    N, CIN, COUT = 2, 4, 8
    H_IN = W_IN = 8
    SIZE = 16                       # UpsamplingNearest2d target

    x = jax.random.normal(kx, (N, CIN, H_IN, W_IN), jnp.float32)
    params = _init_params(kp, CIN, COUT)

    # Tolerances are loosened vs the pure-f32 version because MXU operands are
    # bf16 (accumulation stays f32); structural errors would be O(0.1..1).
    ATOL = RTOL = 3e-2

    # Config 1: module default (scale=25 >= size) -> only the center tap live.
    out1 = jax.block_until_ready(
        scaled_projection_forward(x, params, size=SIZE, scale=25))
    ref1 = _reference_forward(x, params, size=SIZE, scale=25)
    assert out1.shape == (N, COUT, SIZE, SIZE), out1.shape
    assert jnp.allclose(out1, ref1, atol=ATOL, rtol=RTOL), float(
        jnp.max(jnp.abs(out1 - ref1)))

    # Config 2: scale < size -> all 9 taps live; exercises the multi-tap /
    # zero-padding routing path that the default config never reaches.
    out2 = jax.block_until_ready(
        scaled_projection_forward(x, params, size=SIZE, scale=5))
    ref2 = _reference_forward(x, params, size=SIZE, scale=5)
    assert out2.shape == (N, COUT, SIZE, SIZE), out2.shape
    assert jnp.allclose(out2, ref2, atol=ATOL, rtol=RTOL), float(
        jnp.max(jnp.abs(out2 - ref2)))

    print("KERNEL_OK")
</pallas_src>

<mosaic_0001>
module attributes {stable_mosaic.version = 11 : i64} {
  func.func @_scaled_projection_kernel(%arg0: memref<2x4x64xf32, #tpu.memory_space<vmem>>, %arg1: memref<4x1xf32, #tpu.memory_space<vmem>>, %arg2: memref<4x1xf32, #tpu.memory_space<vmem>>, %arg3: memref<1x8x4xbf16, #tpu.memory_space<vmem>>, %arg4: memref<1x64x256xbf16, #tpu.memory_space<vmem>>, %arg5: memref<8x1xf32, #tpu.memory_space<vmem>>, %arg6: memref<2x8x256xf32, #tpu.memory_space<vmem>>) attributes {dimension_semantics = [], scalar_prefetch = 0 : i64, scratch_operands = 0 : i64, tpu.core_type = #tpu.core_type<tc>} {
    %c0 = arith.constant 0 : index
    %c0_0 = arith.constant 0 : index
    %0 = vector.load %arg1[%c0, %c0_0] : memref<4x1xf32, #tpu.memory_space<vmem>>, vector<4x1xf32>
    %c0_1 = arith.constant 0 : index
    %c0_2 = arith.constant 0 : index
    %1 = vector.load %arg2[%c0_1, %c0_2] : memref<4x1xf32, #tpu.memory_space<vmem>>, vector<4x1xf32>
    %c0_3 = arith.constant 0 : index
    %c0_4 = arith.constant 0 : index
    %2 = vector.load %arg5[%c0_3, %c0_4] : memref<8x1xf32, #tpu.memory_space<vmem>>, vector<8x1xf32>
    %c0_5 = arith.constant 0 : index
    %c0_6 = arith.constant 0 : index
    %c0_7 = arith.constant 0 : index
    %3 = vector.load %arg0[%c0_5, %c0_6, %c0_7] : memref<2x4x64xf32, #tpu.memory_space<vmem>>, vector<1x4x64xf32>
    %4 = vector.shape_cast %3 : vector<1x4x64xf32> to vector<4x64xf32>
    %5 = vector.broadcast %0 : vector<4x1xf32> to vector<4x64xf32>
    %6 = arith.mulf %4, %5 : vector<4x64xf32>
    %7 = vector.broadcast %1 : vector<4x1xf32> to vector<4x64xf32>
    %8 = arith.addf %6, %7 : vector<4x64xf32>
    %9 = arith.truncf %8 : vector<4x64xf32> to vector<4x64xbf16>
    %cst = arith.constant 0.000000e+00 : f32
    %10 = vector.broadcast %cst : f32 to vector<8x256xf32>
    %c0_8 = arith.constant 0 : index
    %c0_9 = arith.constant 0 : index
    %c0_10 = arith.constant 0 : index
    %11 = vector.load %arg3[%c0_8, %c0_9, %c0_10] : memref<1x8x4xbf16, #tpu.memory_space<vmem>>, vector<1x8x4xbf16>
    %12 = vector.shape_cast %11 : vector<1x8x4xbf16> to vector<8x4xbf16>
    %cst_11 = arith.constant dense<0.000000e+00> : vector<8x64xf32>
    %13 = tpu.matmul %12, %9, %cst_11 {dimension_numbers = #tpu.dot_dimension_numbers<[1], [0], [0], [1], [0, 0, 1, 1], [], []>} : vector<8x4xbf16>, vector<4x64xbf16>, vector<8x64xf32> -> vector<8x64xf32>
    %14 = arith.truncf %13 : vector<8x64xf32> to vector<8x64xbf16>
    %c0_12 = arith.constant 0 : index
    %c0_13 = arith.constant 0 : index
    %c0_14 = arith.constant 0 : index
    %15 = vector.load %arg4[%c0_12, %c0_13, %c0_14] : memref<1x64x256xbf16, #tpu.memory_space<vmem>>, vector<1x64x256xbf16>
    %16 = vector.shape_cast %15 : vector<1x64x256xbf16> to vector<64x256xbf16>
    %cst_15 = arith.constant dense<0.000000e+00> : vector<8x256xf32>
    %17 = tpu.matmul %14, %16, %cst_15 {dimension_numbers = #tpu.dot_dimension_numbers<[1], [0], [0], [1], [0, 0, 1, 1], [], []>} : vector<8x64xbf16>, vector<64x256xbf16>, vector<8x256xf32> -> vector<8x256xf32>
    %18 = arith.addf %10, %17 : vector<8x256xf32>
    %19 = vector.broadcast %2 : vector<8x1xf32> to vector<8x256xf32>
    %20 = arith.addf %18, %19 : vector<8x256xf32>
    %c0_16 = arith.constant 0 : index
    %c0_17 = arith.constant 0 : index
    %c0_18 = arith.constant 0 : index
    %21 = vector.load %arg6[%c0_16, %c0_17, %c0_18] : memref<2x8x256xf32, #tpu.memory_space<vmem>>, vector<1x8x256xf32>
    %22 = vector.shape_cast %21 : vector<1x8x256xf32> to vector<8x256xf32>
    %23 = vector.shape_cast %20 : vector<8x256xf32> to vector<1x8x256xf32>
    tpu.vector_store %arg6[%c0_16, %c0_17, %c0_18], %23 {strides = array<i32>} : memref<2x8x256xf32, #tpu.memory_space<vmem>>, vector<1x8x256xf32>,
    %c1 = arith.constant 1 : index
    %c0_19 = arith.constant 0 : index
    %c0_20 = arith.constant 0 : index
    %24 = vector.load %arg0[%c1, %c0_19, %c0_20] : memref<2x4x64xf32, #tpu.memory_space<vmem>>, vector<1x4x64xf32>
    %25 = vector.shape_cast %24 : vector<1x4x64xf32> to vector<4x64xf32>
    %26 = vector.broadcast %0 : vector<4x1xf32> to vector<4x64xf32>
    %27 = arith.mulf %25, %26 : vector<4x64xf32>
    %28 = vector.broadcast %1 : vector<4x1xf32> to vector<4x64xf32>
    %29 = arith.addf %27, %28 : vector<4x64xf32>
    %30 = arith.truncf %29 : vector<4x64xf32> to vector<4x64xbf16>
    %cst_21 = arith.constant 0.000000e+00 : f32
    %31 = vector.broadcast %cst_21 : f32 to vector<8x256xf32>
    %c0_22 = arith.constant 0 : index
    %c0_23 = arith.constant 0 : index
    %c0_24 = arith.constant 0 : index
    %32 = vector.load %arg3[%c0_22, %c0_23, %c0_24] : memref<1x8x4xbf16, #tpu.memory_space<vmem>>, vector<1x8x4xbf16>
    %33 = vector.shape_cast %32 : vector<1x8x4xbf16> to vector<8x4xbf16>
    %cst_25 = arith.constant dense<0.000000e+00> : vector<8x64xf32>
    %34 = tpu.matmul %33, %30, %cst_25 {dimension_numbers = #tpu.dot_dimension_numbers<[1], [0], [0], [1], [0, 0, 1, 1], [], []>} : vector<8x4xbf16>, vector<4x64xbf16>, vector<8x64xf32> -> vector<8x64xf32>
    %35 = arith.truncf %34 : vector<8x64xf32> to vector<8x64xbf16>
    %c0_26 = arith.constant 0 : index
    %c0_27 = arith.constant 0 : index
    %c0_28 = arith.constant 0 : index
    %36 = vector.load %arg4[%c0_26, %c0_27, %c0_28] : memref<1x64x256xbf16, #tpu.memory_space<vmem>>, vector<1x64x256xbf16>
    %37 = vector.shape_cast %36 : vector<1x64x256xbf16> to vector<64x256xbf16>
    %cst_29 = arith.constant dense<0.000000e+00> : vector<8x256xf32>
    %38 = tpu.matmul %35, %37, %cst_29 {dimension_numbers = #tpu.dot_dimension_numbers<[1], [0], [0], [1], [0, 0, 1, 1], [], []>} : vector<8x64xbf16>, vector<64x256xbf16>, vector<8x256xf32> -> vector<8x256xf32>
    %39 = arith.addf %31, %38 : vector<8x256xf32>
    %40 = vector.broadcast %2 : vector<8x1xf32> to vector<8x256xf32>
    %41 = arith.addf %39, %40 : vector<8x256xf32>
    %c1_30 = arith.constant 1 : index
    %c0_31 = arith.constant 0 : index
    %c0_32 = arith.constant 0 : index
    %42 = vector.load %arg6[%c1_30, %c0_31, %c0_32] : memref<2x8x256xf32, #tpu.memory_space<vmem>>, vector<1x8x256xf32>
    %43 = vector.shape_cast %42 : vector<1x8x256xf32> to vector<8x256xf32>
    %44 = vector.shape_cast %41 : vector<8x256xf32> to vector<1x8x256xf32>
    tpu.vector_store %arg6[%c1_30, %c0_31, %c0_32], %44 {strides = array<i32>} : memref<2x8x256xf32, #tpu.memory_space<vmem>>, vector<1x8x256xf32>,
    return
  }
}

</mosaic_0001>

<bundles_post_ra>
// kernel: tpu_custom_call.1
= control target key start
LH: loop header
LB: loop body
LE: loop exit
PB: predicated region body
PF: predicated region fallthrough
CT: control target
= control target key end

     0   :  { %11 = vsyncpa [#allocation3], 0  ;;  %s508_s0 = inlined_call_operand.vmem [shape: f32[2,4,64], index: 0, kind: input, shape index: {}]   ;;  %s509_s1 = inlined_call_operand.vmem [shape: f32[4,1], index: 1, kind: input, shape index: {}]   ;;  %s510_s2 = inlined_call_operand.vmem [shape: f32[4,1], index: 2, kind: input, shape index: {}]   ;;  %s511_s3 = inlined_call_operand.vmem [shape: bf16[1,8,4], index: 3, kind: input, shape index: {}]   ;;  %s512_s4 = inlined_call_operand.hbm [shape: bf16[1,64,256], index: 4, kind: input, shape index: {}]   ;;  %s513_s5 = inlined_call_operand.vmem [shape: f32[8,1], index: 5, kind: input, shape index: {}]   ;;  %s514_s6 = inlined_call_operand.hbm [shape: f32[2,8,256], index: 6, kind: output, shape index: {}]  }
   0x1   :  { %12 = vsyncpa [#allocation4], 0  ;;  %s25_s23 = sshll.u32 %s512_s4, 4  ;;  %s439_s24 = smov [#allocation2]   ;;  %s26_s23 = int_to_ptr.hbm [resolvable:$true] %s25_s23 }
   0x2   :  { %s27_s25 = sshll.u32 %s439_s24, 4  ;;  %s440_s26 = smov 128   ;;  %s28_s25 = int_to_ptr.vmem [resolvable:$true] %s27_s25 }
   0x3   :  { %s441_s27 = smov 8  }
   0x4   :  { %33 = dma.hbm_to_vmem [thread:$0]  %s26_s23, 1024, %s28_s25, [#allocation3], %s440_s26, %s440_s26, %s441_s27  }
   0x5   :  { %435 = dma.done.wait [#allocation3], 1024  }
   0x6   :  { %436 = vsyncadd [#allocation3], 4294966272  ;;  %v442_v0 = vmov 0   ;;  %v41_v1 = vld [vmem:[%s509_s1] sm:$0xf]  ;;  %vm63_vm0 = vcmask 1041408  }
   0x7   :  { %385 = vset.pattern.permute.xlu0 %v442_v0  ;;  %386 = vset.pattern.permute.xlu1 %v442_v0  ;;  %v42_v2 = vld [vmem:[%s510_s2] sm:$0xf]  ;;  %v318_v3 = vld [vmem:[#allocation2 + $0x30] sm:$0xf]  ;;  %v369_v4 = vld [vmem:[#allocation2 + $0x34] sm:$0xf0] }
   0x8   :  { %47 = vperm.xlu0 %385, %v41_v1   ;;  %v368_v5 = vld [vmem:[#allocation2 + $0x34] sm:$0xf]  ;;  %v319_v6 = vor.u32 %v369_v4, %v318_v3  ;;  %v320_v7 = vld [vmem:[#allocation2 + $0x38] sm:$0xf0]  ;;  %v310_v8 = vld [vmem:[#allocation2 + $0x20] sm:$0xf] }
   0x9   :  { %v367_v9 = vld [vmem:[#allocation2 + $0x24] sm:$0xf0]  ;;  %v323_v10 = vor.u32 %v368_v5, %v320_v7  ;;  %v366_v11 = vld [vmem:[#allocation2 + $0x24] sm:$0xf]  ;;  %v312_v12 = vld [vmem:[#allocation2 + $0x28] sm:$0xf0] }
   0xa   :  { %142 = vmatpush.bf16.msra.mxu1 %v319_v6  ;;  %v311_v13 = vor.u32 %v367_v9, %v310_v8  ;;  %v315_v14 = vor.u32 %v366_v11, %v312_v12  ;;  %v302_v15 = vld [vmem:[#allocation2 + $0x10] sm:$0xf]  ;;  %v365_v16 = vld [vmem:[#allocation2 + $0x14] sm:$0xf0]  ;;  %v364_v17 = vld [vmem:[#allocation2 + $0x14] sm:$0xf] }
   0xb   :  { %155 = vmatpush.bf16.msra.mxu2 %v323_v10  ;;  %v304_v18 = vld [vmem:[#allocation2 + $0x18] sm:$0xf0]  ;;  %v303_v19 = vor.u32 %v365_v16, %v302_v15  ;;  %v44_v22 = vld [vmem:[%s508_s0] sm:$0xf]  ;;  %v326_v23 = vld [vmem:[%s508_s0 + $0x4] sm:$0xf] }
   0xc   :  { %v307_v20 = vor.u32 %v364_v17, %v304_v18  ;;  %v376_v26 = vld [vmem:[#allocation2 + $0x34] sm:$0xf]  ;;  %v356_v28 = vld [vmem:[#allocation2 + $0x38] sm:$0xf0]  ;;  %v354_v29 = vld [vmem:[#allocation2 + $0x30] sm:$0xf] }
   0xd   :  { %v377_v30 = vld [vmem:[#allocation2 + $0x34] sm:$0xf0]  ;;  %v359_v35 = vor.u32 %v376_v26, %v356_v28  ;;  %v374_v37 = vld [vmem:[#allocation2 + $0x24] sm:$0xf]  ;;  %v348_v38 = vld [vmem:[#allocation2 + $0x28] sm:$0xf0] }
   0xe   :  { %143 = vmatpush.bf16.msra.mxu1 %v311_v13  ;;  %v355_v36 = vor.u32 %v377_v30, %v354_v29  ;;  %v346_v39 = vld [vmem:[#allocation2 + $0x20] sm:$0xf]  ;;  %v375_v40 = vld [vmem:[#allocation2 + $0x24] sm:$0xf0]  ;;  %vm59_vm1 = vcmask 31744   ;;  %v351_v45 = vor.u32 %v374_v37, %v348_v38  ;;  %vm134_vm2 = vcmask 523264  }
   0xf   :  { %156 = vmatpush.bf16.msra.mxu2 %v315_v14  ;;  %v58_v43 = vld [vmem:[%s511_s3] sm:$0xf]  ;;  %v347_v46 = vor.u32 %v375_v40, %v346_v39  ;;  %v363_v48 = vld [vmem:[#allocation2 + $0x4] sm:$0xf0]  ;;  %v362_v49 = vld [vmem:[#allocation2 + $0x4] sm:$0xf] }
  0x10   :  { %53 = vperm.xlu0 %385, %v42_v2   ;;  %v171_v44 = vld [vmem:[%s511_s3] sm:$0xf]  ;;  %v296_v51 = vld [vmem:[#allocation2 + $0x8] sm:$0xf0]  ;;  %v372_v53 = vld [vmem:[#allocation2 + $0x14] sm:$0xf] }
  0x11   :  { %v294_v47 = vld [vmem:[#allocation2] sm:$0xf]  ;;  %v299_v52 = vor.u32 %v362_v49, %v296_v51  ;;  %v340_v54 = vld [vmem:[#allocation2 + $0x18] sm:$0xf0]  ;;  %v338_v55 = vld [vmem:[#allocation2 + $0x10] sm:$0xf] }
  0x12   :  { %144 = vmatpush.bf16.msra.mxu1 %v303_v19  ;;  %v295_v50 = vor.u32 %v363_v48, %v294_v47  ;;  %v343_v56 = vor.u32 %v372_v53, %v340_v54  ;;  %v373_v57 = vld [vmem:[#allocation2 + $0x14] sm:$0xf0]  ;;  %v370_v59 = vld [vmem:[#allocation2 + $0x4] sm:$0xf]  ;;  %v332_v60 = vld [vmem:[#allocation2 + $0x8] sm:$0xf0] }
  0x13   :  { %157 = vmatpush.bf16.msra.mxu2 %v307_v20  ;;  %v339_v58 = vor.u32 %v373_v57, %v338_v55  ;;  %v330_v61 = vld [vmem:[#allocation2] sm:$0xf]  ;;  %v335_v62 = vor.u32 %v370_v59, %v332_v60  ;;  %v371_v63 = vld [vmem:[#allocation2 + $0x4] sm:$0xf0]  ;;  %s278_s16 = sshll.u32 %s514_s6, 4  ;;  %s444_s17 = smov 256   ;;  %s279_s16 = int_to_ptr.hbm [resolvable:$true] %s278_s16 }
  0x14   :  { %v331_v0 = vor.u32 %v371_v63, %v330_v61  ;;  %v43_v1 = vld [vmem:[%s513_s5] sm:$0xff]  ;;  %s443_s5 = smov [#allocation5]   ;;  %s445_s18 = smov 16  }
  0x15   :  { %91 = vperm.xlu1 %386, %v43_v1   ;;  %s276_s13 = sshll.u32 %s443_s5, 4  ;;  %s277_s13 = int_to_ptr.vmem [resolvable:$true] %s276_s13 }
  0x16   :  { %145 = vmatpush.bf16.msra.mxu1 %v295_v50 }
  0x17   :  { %158 = vmatpush.bf16.msra.mxu2 %v299_v52 }
  0x7a   :  { %v48_v21 = vpop.permute.xlu0 %47 }
  0x7b   :  { %v50_v24 = vmul.f32 %v48_v21, %v44_v22  ;;  %v168_v25 = vmul.f32 %v326_v23, %v48_v21 }
  0x82   :  { %v54_v27 = vpop.permute.xlu0 %53 }
  0x83   :  { %v56_v31 = vadd.f32 %v54_v27, %v50_v24  ;;  %v169_v32 = vadd.f32 %v168_v25, %v54_v27 }
  0x85   :  { %v57_v33 = vpack.c.bf16 %v56_v31, %v56_v31  ;;  %v170_v34 = vpack.c.bf16 %v169_v32, %v169_v32 }
  0x87   :  { %v65_v41 = vsel %vm63_vm0, %v57_v33, 0  ;;  %v176_v42 = vsel %vm63_vm0, %v170_v34, 0  ;;  %v92_v8 = vpop.permute.xlu1 %91 }
  0x88   :  { %74 = vmatpush.bf16.msra.mxu0 %v65_v41  ;;  %185 = vmatpush.bf16.msra.mxu3 %v176_v42 }
  0x8b   :  { %291 = vmatmul.msk.bf16.vlgmr.msra.gmra.mxu0 %vm59_vm1, %v58_v43  ;;  %327 = vmatmul.msk.bf16.vlgmr.msra.gmra.mxu3 %vm59_vm1, %v171_v44 }
  0x8c   :  { %260 = vmatpush.bf16.msrb.mxu3 %v359_v35  ;;  %247 = vmatpush.bf16.msrb.mxu0 %v355_v36 }
  0x90   :  { %261 = vmatpush.bf16.msrb.mxu3 %v351_v45  ;;  %248 = vmatpush.bf16.msrb.mxu0 %v347_v46 }
  0x94   :  { %262 = vmatpush.bf16.msrb.mxu3 %v343_v56  ;;  %249 = vmatpush.bf16.msrb.mxu0 %v339_v58 }
  0x98   :  { %263 = vmatpush.bf16.msrb.mxu3 %v335_v62  ;;  %250 = vmatpush.bf16.msrb.mxu0 %v331_v0 }
 0x108   :  { %v76_v2 = vpop.f32.mrf.mxu0 }
 0x109   :  { %v80_v3 = vpack.c.bf16 %v76_v2, %v76_v2 }
 0x10b   :  { %324 = vmatmul.msk.bf16.vlgmr.msra.gmra.mxu1 %vm134_vm2, %v80_v3  ;;  %325 = vmatmul.msk.bf16.vlgmr.msra.gmra.mxu2 %vm134_vm2, %v80_v3 }
 0x10e   :  { %v187_v4 = vpop.f32.mrf.mxu3 }
 0x10f   :  { %v191_v5 = vpack.c.bf16 %v187_v4, %v187_v4 }
 0x110   :  { %v78_v6 = vpop.f32.mrf.mxu0 }
 0x111   :  { %360 = vmatmul.msk.bf16.vlgmr.msrb.gmra.mxu0 %vm134_vm2, %v191_v5  ;;  %361 = vmatmul.msk.bf16.vlgmr.msrb.gmra.mxu3 %vm134_vm2, %v191_v5 }
 0x116   :  { %v189_v7 = vpop.f32.mrf.mxu3 }
 0x188   :  { %v147_v9 = vpop.f32.mrf.mxu1 }
 0x189   :  { %v148_v10 = vadd.f32 %v147_v9, %v92_v8 }
 0x18b   :  { %164 = vst [vmem:[#allocation5] sm:$0xff] %v148_v10 }
 0x18e   :  { %v160_v11 = vpop.f32.mrf.mxu2  ;;  %v252_v12 = vpop.f32.mrf.mxu0 }
 0x18f   :  { %v161_v13 = vadd.f32 %v160_v11, %v92_v8  ;;  %v253_v14 = vadd.f32 %v252_v12, %v92_v8 }
 0x190   :  { %v149_v15 = vpop.f32.mrf.mxu1 }
 0x191   :  { %165 = vst [vmem:[#allocation5 + $0x8] sm:$0xff] %v161_v13 }
 0x192   :  { %270 = vst [vmem:[#allocation5 + $0x10] sm:$0xff] %v253_v14 }
 0x194   :  { %v265_v16 = vpop.f32.mrf.mxu3 }
 0x195   :  { %v266_v17 = vadd.f32 %v265_v16, %v92_v8 }
 0x196   :  { %v162_v18 = vpop.f32.mrf.mxu2  ;;  %v254_v19 = vpop.f32.mrf.mxu0 }
 0x197   :  { %271 = vst [vmem:[#allocation5 + $0x18] sm:$0xff] %v266_v17 }
 0x198   :  { %284 = dma.vmem_to_hbm [thread:$0]  %s277_s13, 512, %s279_s16, [#allocation4], %s444_s17, %s444_s17, %s445_s18  }
 0x19c   :  { %v267_v20 = vpop.f32.mrf.mxu3 }
 0x19d   :  { %437 = dma.done.wait [#allocation4], 512  }
 0x19e   :  { %438 = vsyncadd [#allocation4], 4294966784 }
 0x19f   :  { %289 = vsyncpa [#allocation3], 1 }
 0x1a0   :  { %290 = vsyncpa [#allocation4], 1 }

</bundles_post_ra>
